<compile_context>
chip_gen: v6e
topology: v6e:2x2x1
jax: 0.10.0
libtpu: 0.0.40
codegen_flags: <defaults>
</compile_context>

<pallas_src>
import functools

import jax
import jax.numpy as jnp
from jax.experimental import pallas as pl
from jax.experimental.pallas import tpu as pltpu


def _sigmoid(x):
    return 1.0 / (1.0 + jnp.exp(-x))


def _attn_decoder_kernel(H, V,
                         emb_ref, enc_ref, h_ref,
                         wattn_ref, wc_ref, wih_ref, whh_ref, wout_ref, bias_ref,
                         logp_ref, hout_ref, attn_ref):
    emb = emb_ref[...]              # (B, H)
    h = h_ref[...]                  # (B, H)
    enc = enc_ref[...]              # (L, B, H)
    bias = bias_ref[...]            # (5, W) packed bias slab

    b1 = bias[0:1, 0:1]             # (1, 1)   attn1 bias (scalar)
    bc = bias[1:2, 0:H]             # (1, H)   attn_combine bias
    bih = bias[2:3, 0:3 * H]        # (1, 3H)  GRU input bias (r,z,n)
    bhh = bias[3:4, 0:3 * H]        # (1, 3H)  GRU hidden bias (r,z,n)
    bout = bias[4:5, 0:V]           # (1, V)   output bias

    w1e = wattn_ref[0:1, :]         # (1, H) attn1 weight acting on embedded
    w1c = wattn_ref[1:2, :]         # (1, H) attn1 weight acting on encoder_outputs

    # ---- attention scores: one VPU multiply + lane reduce (no 1-lane matmuls)
    # score[l,b] = sum_h emb[b,h]*w1e[h] + sum_h enc[l,b,h]*w1c[h] + b1
    prod = emb[None, :, :] * w1e[None, :, :] + enc * w1c[None, :, :]    # (L, B, H)
    scores = jnp.sum(prod, axis=-1, keepdims=True) + b1[None, :, :]     # (L, B, 1)

    # softmax over the encoder-position axis (PyTorch: softmax over dim=0)
    m = jnp.max(scores, axis=0, keepdims=True)                          # (1, B, 1)
    e = jnp.exp(scores - m)
    denom = jnp.sum(e, axis=0, keepdims=True)                           # (1, B, 1)
    attn_w = e * pl.reciprocal(denom, approx=True)                      # (L, B, 1)
    attn_ref[...] = attn_w

    # attention-weighted sum of encoder outputs: single broadcast-mul + reduce
    attn_applied = jnp.sum(attn_w * enc, axis=0)                        # (B, H)

    # ---- attn_combine(cat(embedded, attn_applied)) then ReLU (n_layers = 1)
    comb_in = jnp.concatenate([emb, attn_applied], axis=1)              # (B, 2H)
    comb = jnp.dot(comb_in, wc_ref[...],
                   preferred_element_type=jnp.float32) + bc             # (B, H)
    x = jnp.maximum(comb, 0.0)

    # ---- single GRU step, fused gate matmuls (PyTorch gate order: r, z, n)
    gi = jnp.dot(x, wih_ref[...], preferred_element_type=jnp.float32) + bih   # (B, 3H)
    gh = jnp.dot(h, whh_ref[...], preferred_element_type=jnp.float32) + bhh   # (B, 3H)
    r = _sigmoid(gi[:, 0:H] + gh[:, 0:H])
    z = _sigmoid(gi[:, H:2 * H] + gh[:, H:2 * H])
    n = jnp.tanh(gi[:, 2 * H:3 * H] + r * gh[:, 2 * H:3 * H])
    h_new = (1.0 - z) * n + z * h
    hout_ref[...] = h_new

    # ---- output projection + log_softmax (dim=1)
    logits = jnp.dot(h_new, wout_ref[...],
                     preferred_element_type=jnp.float32) + bout          # (B, V)
    lm = jnp.max(logits, axis=1, keepdims=True)
    shifted = logits - lm
    lse = jnp.log(jnp.sum(jnp.exp(shifted), axis=1, keepdims=True))
    logp_ref[...] = shifted - lse


def pack_params(params):
    """One-time weight packing / transposition, hoisted out of the per-token path."""
    H = params["w_comb"].shape[0]
    V = params["w_out"].shape[0]

    w_attn1 = params["w_attn1"]                                         # (1, 2H)
    wattn = jnp.concatenate([w_attn1[:, :H], w_attn1[:, H:]], axis=0)   # (2, H)

    W = max(3 * H, V, H, 1)
    bias = jnp.zeros((5, W), jnp.float32)
    bias = bias.at[0, 0].set(params["b_attn1"][0])
    bias = bias.at[1, :H].set(params["b_comb"])
    bias = bias.at[2, :3 * H].set(params["b_ih"])
    bias = bias.at[3, :3 * H].set(params["b_hh"])
    bias = bias.at[4, :V].set(params["b_out"])

    # TODO(synk): at realistic H/V, cast wc/wih/whh/wout to bfloat16 here (keep f32
    # accumulation in-kernel) and tile w_out over V with a grid axis for v7x VMEM.
    return {
        "embedding": params["embedding"].astype(jnp.float32),
        "wattn": wattn.astype(jnp.float32),                 # (2, H)
        "wc":   params["w_comb"].T.astype(jnp.float32),     # (2H, H)
        "wih":  params["w_ih"].T.astype(jnp.float32),       # (H, 3H)
        "whh":  params["w_hh"].T.astype(jnp.float32),       # (H, 3H)
        "wout": params["w_out"].T.astype(jnp.float32),      # (H, V)
        "bias": bias,                                       # (5, max(3H, V))
    }


def attn_decoder_forward(packed, input_ids, hidden, encoder_outputs):
    """Mirrors AttnDecoderRNN.forward(input, hidden, encoder_outputs, max_length)."""
    L, B, H = encoder_outputs.shape
    V = packed["wout"].shape[1]

    # embedding lookup (glue) -- embedded[0] in the PyTorch code
    emb = packed["embedding"][input_ids].astype(jnp.float32)            # (B, H)
    # TODO(synk): nn.Dropout(p=0.1) is identity in eval mode; training dropout omitted.
    h0 = hidden[0].astype(jnp.float32)                                  # (B, H)

    args = (emb, encoder_outputs.astype(jnp.float32), h0,
            packed["wattn"], packed["wc"], packed["wih"], packed["whh"],
            packed["wout"], packed["bias"])

    def full_spec(x):
        nd = x.ndim
        return pl.BlockSpec(x.shape, lambda i, _nd=nd: (0,) * _nd)

    out_shape = (jax.ShapeDtypeStruct((B, V), jnp.float32),
                 jax.ShapeDtypeStruct((B, H), jnp.float32),
                 jax.ShapeDtypeStruct((L, B, 1), jnp.float32))
    out_specs = (pl.BlockSpec((B, V), lambda i: (0, 0)),
                 pl.BlockSpec((B, H), lambda i: (0, 0)),
                 pl.BlockSpec((L, B, 1), lambda i: (0, 0, 0)))

    kernel = functools.partial(_attn_decoder_kernel, H, V)
    logp, h_new, attn_w = pl.pallas_call(
        kernel,
        grid=(1,),
        in_specs=[full_spec(a) for a in args],
        out_specs=out_specs,
        out_shape=out_shape,
        compiler_params=pltpu.CompilerParams(dimension_semantics=("arbitrary",)),
    )(*args)

    # PyTorch conventions: output (B,V), hidden (1,B,H), attn_weights (L,B,1)
    return logp, h_new[None], attn_w


def reference_forward(params, input_ids, hidden, encoder_outputs):
    """Pure-JAX reference matching the PyTorch forward exactly (eval mode)."""
    L, B, H = encoder_outputs.shape
    emb = params["embedding"][input_ids].astype(jnp.float32)
    h = hidden[0]
    cat = jnp.concatenate(
        [jnp.broadcast_to(emb[None], (L, B, H)), encoder_outputs], axis=2)      # (L,B,2H)
    scores = jnp.einsum("lbk,ok->lbo", cat, params["w_attn1"]) + params["b_attn1"]  # (L,B,1)
    attn_w = jax.nn.softmax(scores, axis=0)
    attn_applied = jnp.sum(attn_w * encoder_outputs, axis=0)                    # (B,H)
    out = (jnp.concatenate([emb, attn_applied], axis=1) @ params["w_comb"].T
           + params["b_comb"])
    x = jax.nn.relu(out)
    gi = x @ params["w_ih"].T + params["b_ih"]
    gh = h @ params["w_hh"].T + params["b_hh"]
    r = jax.nn.sigmoid(gi[:, :H] + gh[:, :H])
    z = jax.nn.sigmoid(gi[:, H:2 * H] + gh[:, H:2 * H])
    n = jnp.tanh(gi[:, 2 * H:] + r * gh[:, 2 * H:])
    h_new = (1.0 - z) * n + z * h
    logits = h_new @ params["w_out"].T + params["b_out"]
    return jax.nn.log_softmax(logits, axis=1), h_new[None], attn_w


def init_params(key, hidden_size, output_size, max_length):
    H, V = hidden_size, output_size
    ks = jax.random.split(key, 12)
    s = 0.1
    return {
        "embedding": jax.random.normal(ks[0], (V, H), jnp.float32) * s,
        "w_attn1":   jax.random.normal(ks[1], (1, 2 * H), jnp.float32) * s,
        "b_attn1":   jax.random.normal(ks[2], (1,), jnp.float32) * s,
        "w_comb":    jax.random.normal(ks[3], (H, 2 * H), jnp.float32) * s,
        "b_comb":    jax.random.normal(ks[4], (H,), jnp.float32) * s,
        "w_ih":      jax.random.normal(ks[5], (3 * H, H), jnp.float32) * s,
        "w_hh":      jax.random.normal(ks[6], (3 * H, H), jnp.float32) * s,
        "b_ih":      jax.random.normal(ks[7], (3 * H,), jnp.float32) * s,
        "b_hh":      jax.random.normal(ks[8], (3 * H,), jnp.float32) * s,
        "w_out":     jax.random.normal(ks[9], (V, H), jnp.float32) * s,
        "b_out":     jax.random.normal(ks[10], (V,), jnp.float32) * s,
    }


if __name__ == "__main__":
    B, H, V, L = 2, 32, 16, 8   # batch, hidden_size, output_size, max_length

    key = jax.random.PRNGKey(0)
    k_par, k_ids, k_enc = jax.random.split(key, 3)

    params = init_params(k_par, H, V, L)
    input_ids = jax.random.randint(k_ids, (B,), 0, V)            # token indices
    hidden = jnp.zeros((1, B, H), jnp.float32)                   # initHidden()
    encoder_outputs = jax.random.normal(k_enc, (L, B, H), jnp.float32)

    packed = pack_params(params)                                 # one-time weight packing
    fwd = jax.jit(attn_decoder_forward)

    logp, h_new, attn_w = fwd(packed, input_ids, hidden, encoder_outputs)
    jax.block_until_ready((logp, h_new, attn_w))

    # correctness check against plain-JAX reference
    r_logp, r_h, r_attn = reference_forward(params, input_ids, hidden, encoder_outputs)
    assert logp.shape == (B, V) and h_new.shape == (1, B, H) and attn_w.shape == (L, B, 1)
    assert jnp.allclose(logp, r_logp, atol=1e-2, rtol=1e-2)
    assert jnp.allclose(h_new, r_h, atol=1e-2, rtol=1e-2)
    assert jnp.allclose(attn_w, r_attn, atol=1e-2, rtol=1e-2)

    print("KERNEL_OK")
</pallas_src>

<mosaic_0001>
module attributes {stable_mosaic.version = 11 : i64} {
  func.func @_attn_decoder_kernel(%arg0: i32, %arg1: memref<2x32xf32, #tpu.memory_space<vmem>>, %arg2: memref<8x2x32xf32, #tpu.memory_space<vmem>>, %arg3: memref<2x32xf32, #tpu.memory_space<vmem>>, %arg4: memref<2x32xf32, #tpu.memory_space<vmem>>, %arg5: memref<64x32xf32, #tpu.memory_space<vmem>>, %arg6: memref<32x96xf32, #tpu.memory_space<vmem>>, %arg7: memref<32x96xf32, #tpu.memory_space<vmem>>, %arg8: memref<32x16xf32, #tpu.memory_space<vmem>>, %arg9: memref<5x96xf32, #tpu.memory_space<vmem>>, %arg10: memref<2x16xf32, #tpu.memory_space<vmem>>, %arg11: memref<2x32xf32, #tpu.memory_space<vmem>>, %arg12: memref<8x2x1xf32, #tpu.memory_space<vmem>>) attributes {dimension_semantics = [#tpu.dimension_semantics<arbitrary>], iteration_bounds = array<i64: 1>, scalar_prefetch = 0 : i64, scratch_operands = 0 : i64, tpu.core_type = #tpu.core_type<tc>, window_params = [{pipeline_mode = #tpu.pipeline_mode<synchronous>, transform_indices = @transform_0, window_bounds = array<i64: 2, 32>}, {pipeline_mode = #tpu.pipeline_mode<synchronous>, transform_indices = @transform_1, window_bounds = array<i64: 8, 2, 32>}, {pipeline_mode = #tpu.pipeline_mode<synchronous>, transform_indices = @transform_2, window_bounds = array<i64: 2, 32>}, {pipeline_mode = #tpu.pipeline_mode<synchronous>, transform_indices = @transform_3, window_bounds = array<i64: 2, 32>}, {pipeline_mode = #tpu.pipeline_mode<synchronous>, transform_indices = @transform_4, window_bounds = array<i64: 64, 32>}, {pipeline_mode = #tpu.pipeline_mode<synchronous>, transform_indices = @transform_5, window_bounds = array<i64: 32, 96>}, {pipeline_mode = #tpu.pipeline_mode<synchronous>, transform_indices = @transform_6, window_bounds = array<i64: 32, 96>}, {pipeline_mode = #tpu.pipeline_mode<synchronous>, transform_indices = @transform_7, window_bounds = array<i64: 32, 16>}, {pipeline_mode = #tpu.pipeline_mode<synchronous>, transform_indices = @transform_8, window_bounds = array<i64: 5, 96>}, {pipeline_mode = #tpu.pipeline_mode<synchronous>, transform_indices = @transform_9, window_bounds = array<i64: 2, 16>}, {pipeline_mode = #tpu.pipeline_mode<synchronous>, transform_indices = @transform_10, window_bounds = array<i64: 2, 32>}, {pipeline_mode = #tpu.pipeline_mode<synchronous>, transform_indices = @transform_11, window_bounds = array<i64: 8, 2, 1>}]} {
    %c0 = arith.constant 0 : index
    %c0_0 = arith.constant 0 : index
    %0 = vector.load %arg1[%c0, %c0_0] : memref<2x32xf32, #tpu.memory_space<vmem>>, vector<2x32xf32>
    %c0_1 = arith.constant 0 : index
    %c0_2 = arith.constant 0 : index
    %1 = vector.load %arg3[%c0_1, %c0_2] : memref<2x32xf32, #tpu.memory_space<vmem>>, vector<2x32xf32>
    %c0_3 = arith.constant 0 : index
    %c0_4 = arith.constant 0 : index
    %c0_5 = arith.constant 0 : index
    %2 = vector.load %arg2[%c0_3, %c0_4, %c0_5] : memref<8x2x32xf32, #tpu.memory_space<vmem>>, vector<8x2x32xf32>
    %c0_6 = arith.constant 0 : index
    %c0_7 = arith.constant 0 : index
    %3 = vector.load %arg9[%c0_6, %c0_7] : memref<5x96xf32, #tpu.memory_space<vmem>>, vector<5x96xf32>
    %4 = vector.extract_strided_slice %3 {offsets = [0, 0], sizes = [1, 1], strides = [1, 1]} : vector<5x96xf32> to vector<1x1xf32>
    %5 = vector.extract_strided_slice %3 {offsets = [1, 0], sizes = [1, 32], strides = [1, 1]} : vector<5x96xf32> to vector<1x32xf32>
    %6 = vector.extract_strided_slice %3 {offsets = [2, 0], sizes = [1, 96], strides = [1, 1]} : vector<5x96xf32> to vector<1x96xf32>
    %7 = vector.extract_strided_slice %3 {offsets = [3, 0], sizes = [1, 96], strides = [1, 1]} : vector<5x96xf32> to vector<1x96xf32>
    %8 = vector.extract_strided_slice %3 {offsets = [4, 0], sizes = [1, 16], strides = [1, 1]} : vector<5x96xf32> to vector<1x16xf32>
    %c0_8 = arith.constant 0 : index
    %c0_9 = arith.constant 0 : index
    %9 = vector.load %arg4[%c0_8, %c0_9] : memref<2x32xf32, #tpu.memory_space<vmem>>, vector<1x32xf32>
    %c1 = arith.constant 1 : index
    %c0_10 = arith.constant 0 : index
    %10 = vector.load %arg4[%c1, %c0_10] : memref<2x32xf32, #tpu.memory_space<vmem>>, vector<1x32xf32>
    %11 = vector.shape_cast %0 : vector<2x32xf32> to vector<1x2x32xf32>
    %12 = vector.shape_cast %9 : vector<1x32xf32> to vector<1x1x32xf32>
    %13 = vector.broadcast %12 : vector<1x1x32xf32> to vector<1x2x32xf32>
    %14 = arith.mulf %11, %13 : vector<1x2x32xf32>
    %15 = vector.shape_cast %10 : vector<1x32xf32> to vector<1x1x32xf32>
    %16 = vector.broadcast %15 : vector<1x1x32xf32> to vector<8x2x32xf32>
    %17 = arith.mulf %2, %16 : vector<8x2x32xf32>
    %18 = vector.broadcast %14 : vector<1x2x32xf32> to vector<8x2x32xf32>
    %19 = arith.addf %18, %17 : vector<8x2x32xf32>
    %cst = arith.constant dense<0.000000e+00> : vector<8x2xf32>
    %20 = vector.multi_reduction <add>, %19, %cst [2] : vector<8x2x32xf32> to vector<8x2xf32>
    %21 = vector.shape_cast %20 : vector<8x2xf32> to vector<8x2x1xf32>
    %22 = vector.shape_cast %4 : vector<1x1xf32> to vector<1x1x1xf32>
    %23 = vector.broadcast %22 : vector<1x1x1xf32> to vector<8x2x1xf32>
    %24 = arith.addf %21, %23 : vector<8x2x1xf32>
    %cst_11 = arith.constant dense<0xFF800000> : vector<2x1xf32>
    %25 = vector.multi_reduction <maximumf>, %24, %cst_11 [0] : vector<8x2x1xf32> to vector<2x1xf32>
    %26 = vector.shape_cast %25 : vector<2x1xf32> to vector<1x2x1xf32>
    %27 = vector.broadcast %26 : vector<1x2x1xf32> to vector<8x2x1xf32>
    %28 = arith.subf %24, %27 : vector<8x2x1xf32>
    %29 = math.exp %28 : vector<8x2x1xf32>
    %cst_12 = arith.constant dense<0.000000e+00> : vector<2x1xf32>
    %30 = vector.multi_reduction <add>, %29, %cst_12 [0] : vector<8x2x1xf32> to vector<2x1xf32>
    %31 = vector.shape_cast %30 : vector<2x1xf32> to vector<1x2x1xf32>
    %32 = tpu.reciprocal %31 {approx = true} : vector<1x2x1xf32> -> vector<1x2x1xf32>
    %33 = vector.broadcast %32 : vector<1x2x1xf32> to vector<8x2x1xf32>
    %34 = arith.mulf %29, %33 : vector<8x2x1xf32>
    %c0_13 = arith.constant 0 : index
    %c0_14 = arith.constant 0 : index
    %c0_15 = arith.constant 0 : index
    %35 = vector.load %arg12[%c0_13, %c0_14, %c0_15] : memref<8x2x1xf32, #tpu.memory_space<vmem>>, vector<8x2x1xf32>
    tpu.vector_store %arg12[%c0_13, %c0_14, %c0_15], %34 {strides = array<i32>} : memref<8x2x1xf32, #tpu.memory_space<vmem>>, vector<8x2x1xf32>,
    %36 = vector.broadcast %34 : vector<8x2x1xf32> to vector<8x2x32xf32>
    %37 = arith.mulf %36, %2 : vector<8x2x32xf32>
    %cst_16 = arith.constant dense<0.000000e+00> : vector<2x32xf32>
    %38 = vector.multi_reduction <add>, %37, %cst_16 [0] : vector<8x2x32xf32> to vector<2x32xf32>
    %39 = tpu.concatenate %0, %38 in 1 : vector<2x32xf32>, vector<2x32xf32> -> vector<2x64xf32>
    %c0_17 = arith.constant 0 : index
    %c0_18 = arith.constant 0 : index
    %40 = vector.load %arg5[%c0_17, %c0_18] : memref<64x32xf32, #tpu.memory_space<vmem>>, vector<64x32xf32>
    %cst_19 = arith.constant dense<0.000000e+00> : vector<2x32xf32>
    %41 = tpu.matmul %39, %40, %cst_19 {dimension_numbers = #tpu.dot_dimension_numbers<[1], [0], [0], [1], [0, 0, 1, 1], [], []>} : vector<2x64xf32>, vector<64x32xf32>, vector<2x32xf32> -> vector<2x32xf32>
    %42 = vector.broadcast %5 : vector<1x32xf32> to vector<2x32xf32>
    %43 = arith.addf %41, %42 : vector<2x32xf32>
    %cst_20 = arith.constant 0.000000e+00 : f32
    %44 = vector.broadcast %cst_20 : f32 to vector<2x32xf32>
    %45 = arith.maximumf %43, %44 : vector<2x32xf32>
    %c0_21 = arith.constant 0 : index
    %c0_22 = arith.constant 0 : index
    %46 = vector.load %arg6[%c0_21, %c0_22] : memref<32x96xf32, #tpu.memory_space<vmem>>, vector<32x96xf32>
    %cst_23 = arith.constant dense<0.000000e+00> : vector<2x96xf32>
    %47 = tpu.matmul %45, %46, %cst_23 {dimension_numbers = #tpu.dot_dimension_numbers<[1], [0], [0], [1], [0, 0, 1, 1], [], []>} : vector<2x32xf32>, vector<32x96xf32>, vector<2x96xf32> -> vector<2x96xf32>
    %48 = vector.broadcast %6 : vector<1x96xf32> to vector<2x96xf32>
    %49 = arith.addf %47, %48 : vector<2x96xf32>
    %c0_24 = arith.constant 0 : index
    %c0_25 = arith.constant 0 : index
    %50 = vector.load %arg7[%c0_24, %c0_25] : memref<32x96xf32, #tpu.memory_space<vmem>>, vector<32x96xf32>
    %cst_26 = arith.constant dense<0.000000e+00> : vector<2x96xf32>
    %51 = tpu.matmul %1, %50, %cst_26 {dimension_numbers = #tpu.dot_dimension_numbers<[1], [0], [0], [1], [0, 0, 1, 1], [], []>} : vector<2x32xf32>, vector<32x96xf32>, vector<2x96xf32> -> vector<2x96xf32>
    %52 = vector.broadcast %7 : vector<1x96xf32> to vector<2x96xf32>
    %53 = arith.addf %51, %52 : vector<2x96xf32>
    %54 = vector.extract_strided_slice %49 {offsets = [0, 0], sizes = [2, 32], strides = [1, 1]} : vector<2x96xf32> to vector<2x32xf32>
    %55 = vector.extract_strided_slice %53 {offsets = [0, 0], sizes = [2, 32], strides = [1, 1]} : vector<2x96xf32> to vector<2x32xf32>
    %56 = arith.addf %54, %55 : vector<2x32xf32>
    %cst_27 = arith.constant 0.000000e+00 : f32
    %57 = vector.broadcast %cst_27 : f32 to vector<2x32xf32>
    %58 = arith.subf %57, %56 : vector<2x32xf32>
    %59 = math.exp %58 : vector<2x32xf32>
    %cst_28 = arith.constant 1.000000e+00 : f32
    %60 = vector.broadcast %cst_28 : f32 to vector<2x32xf32>
    %61 = arith.addf %60, %59 : vector<2x32xf32>
    %cst_29 = arith.constant 1.000000e+00 : f32
    %62 = vector.broadcast %cst_29 : f32 to vector<2x32xf32>
    %63 = arith.divf %62, %61 : vector<2x32xf32>
    %64 = vector.extract_strided_slice %49 {offsets = [0, 32], sizes = [2, 32], strides = [1, 1]} : vector<2x96xf32> to vector<2x32xf32>
    %65 = vector.extract_strided_slice %53 {offsets = [0, 32], sizes = [2, 32], strides = [1, 1]} : vector<2x96xf32> to vector<2x32xf32>
    %66 = arith.addf %64, %65 : vector<2x32xf32>
    %cst_30 = arith.constant 0.000000e+00 : f32
    %67 = vector.broadcast %cst_30 : f32 to vector<2x32xf32>
    %68 = arith.subf %67, %66 : vector<2x32xf32>
    %69 = math.exp %68 : vector<2x32xf32>
    %cst_31 = arith.constant 1.000000e+00 : f32
    %70 = vector.broadcast %cst_31 : f32 to vector<2x32xf32>
    %71 = arith.addf %70, %69 : vector<2x32xf32>
    %cst_32 = arith.constant 1.000000e+00 : f32
    %72 = vector.broadcast %cst_32 : f32 to vector<2x32xf32>
    %73 = arith.divf %72, %71 : vector<2x32xf32>
    %74 = vector.extract_strided_slice %49 {offsets = [0, 64], sizes = [2, 32], strides = [1, 1]} : vector<2x96xf32> to vector<2x32xf32>
    %75 = vector.extract_strided_slice %53 {offsets = [0, 64], sizes = [2, 32], strides = [1, 1]} : vector<2x96xf32> to vector<2x32xf32>
    %76 = arith.mulf %63, %75 : vector<2x32xf32>
    %77 = arith.addf %74, %76 : vector<2x32xf32>
    %78 = math.tanh %77 : vector<2x32xf32>
    %cst_33 = arith.constant 1.000000e+00 : f32
    %79 = vector.broadcast %cst_33 : f32 to vector<2x32xf32>
    %80 = arith.subf %79, %73 : vector<2x32xf32>
    %81 = arith.mulf %80, %78 : vector<2x32xf32>
    %82 = arith.mulf %73, %1 : vector<2x32xf32>
    %83 = arith.addf %81, %82 : vector<2x32xf32>
    %c0_34 = arith.constant 0 : index
    %c0_35 = arith.constant 0 : index
    %84 = vector.load %arg11[%c0_34, %c0_35] : memref<2x32xf32, #tpu.memory_space<vmem>>, vector<2x32xf32>
    tpu.vector_store %arg11[%c0_34, %c0_35], %83 {strides = array<i32>} : memref<2x32xf32, #tpu.memory_space<vmem>>, vector<2x32xf32>,
    %c0_36 = arith.constant 0 : index
    %c0_37 = arith.constant 0 : index
    %85 = vector.load %arg8[%c0_36, %c0_37] : memref<32x16xf32, #tpu.memory_space<vmem>>, vector<32x16xf32>
    %cst_38 = arith.constant dense<0.000000e+00> : vector<2x16xf32>
    %86 = tpu.matmul %83, %85, %cst_38 {dimension_numbers = #tpu.dot_dimension_numbers<[1], [0], [0], [1], [0, 0, 1, 1], [], []>} : vector<2x32xf32>, vector<32x16xf32>, vector<2x16xf32> -> vector<2x16xf32>
    %87 = vector.broadcast %8 : vector<1x16xf32> to vector<2x16xf32>
    %88 = arith.addf %86, %87 : vector<2x16xf32>
    %cst_39 = arith.constant dense<0xFF800000> : vector<2xf32>
    %89 = vector.multi_reduction <maximumf>, %88, %cst_39 [1] : vector<2x16xf32> to vector<2xf32>
    %90 = vector.shape_cast %89 : vector<2xf32> to vector<2x1xf32>
    %91 = vector.broadcast %90 : vector<2x1xf32> to vector<2x16xf32>
    %92 = arith.subf %88, %91 : vector<2x16xf32>
    %93 = math.exp %92 : vector<2x16xf32>
    %cst_40 = arith.constant dense<0.000000e+00> : vector<2xf32>
    %94 = vector.multi_reduction <add>, %93, %cst_40 [1] : vector<2x16xf32> to vector<2xf32>
    %95 = vector.shape_cast %94 : vector<2xf32> to vector<2x1xf32>
    %96 = math.log %95 : vector<2x1xf32>
    %97 = vector.broadcast %96 : vector<2x1xf32> to vector<2x16xf32>
    %98 = arith.subf %92, %97 : vector<2x16xf32>
    %c0_41 = arith.constant 0 : index
    %c0_42 = arith.constant 0 : index
    %99 = vector.load %arg10[%c0_41, %c0_42] : memref<2x16xf32, #tpu.memory_space<vmem>>, vector<2x16xf32>
    tpu.vector_store %arg10[%c0_41, %c0_42], %98 {strides = array<i32>} : memref<2x16xf32, #tpu.memory_space<vmem>>, vector<2x16xf32>,
    return
  }
  func.func @transform_0(%arg0: i32) -> (i32, i32) {
    %c0_i32 = arith.constant 0 : i32
    %c0_i32_0 = arith.constant 0 : i32
    %c0_i32_1 = arith.constant 0 : i32
    return %c0_i32, %c0_i32_0 : i32, i32
  }
  func.func @transform_1(%arg0: i32) -> (i32, i32, i32) {
    %c0_i32 = arith.constant 0 : i32
    %c0_i32_0 = arith.constant 0 : i32
    %c0_i32_1 = arith.constant 0 : i32
    %c0_i32_2 = arith.constant 0 : i32
    return %c0_i32, %c0_i32_0, %c0_i32_1 : i32, i32, i32
  }
  func.func @transform_2(%arg0: i32) -> (i32, i32) {
    %c0_i32 = arith.constant 0 : i32
    %c0_i32_0 = arith.constant 0 : i32
    %c0_i32_1 = arith.constant 0 : i32
    return %c0_i32, %c0_i32_0 : i32, i32
  }
  func.func @transform_3(%arg0: i32) -> (i32, i32) {
    %c0_i32 = arith.constant 0 : i32
    %c0_i32_0 = arith.constant 0 : i32
    %c0_i32_1 = arith.constant 0 : i32
    return %c0_i32, %c0_i32_0 : i32, i32
  }
  func.func @transform_4(%arg0: i32) -> (i32, i32) {
    %c0_i32 = arith.constant 0 : i32
    %c0_i32_0 = arith.constant 0 : i32
    %c0_i32_1 = arith.constant 0 : i32
    return %c0_i32, %c0_i32_0 : i32, i32
  }
  func.func @transform_5(%arg0: i32) -> (i32, i32) {
    %c0_i32 = arith.constant 0 : i32
    %c0_i32_0 = arith.constant 0 : i32
    %c0_i32_1 = arith.constant 0 : i32
    return %c0_i32, %c0_i32_0 : i32, i32
  }
  func.func @transform_6(%arg0: i32) -> (i32, i32) {
    %c0_i32 = arith.constant 0 : i32
    %c0_i32_0 = arith.constant 0 : i32
    %c0_i32_1 = arith.constant 0 : i32
    return %c0_i32, %c0_i32_0 : i32, i32
  }
  func.func @transform_7(%arg0: i32) -> (i32, i32) {
    %c0_i32 = arith.constant 0 : i32
    %c0_i32_0 = arith.constant 0 : i32
    %c0_i32_1 = arith.constant 0 : i32
    return %c0_i32, %c0_i32_0 : i32, i32
  }
  func.func @transform_8(%arg0: i32) -> (i32, i32) {
    %c0_i32 = arith.constant 0 : i32
    %c0_i32_0 = arith.constant 0 : i32
    %c0_i32_1 = arith.constant 0 : i32
    return %c0_i32, %c0_i32_0 : i32, i32
  }
  func.func @transform_9(%arg0: i32) -> (i32, i32) {
    %c0_i32 = arith.constant 0 : i32
    %c0_i32_0 = arith.constant 0 : i32
    %c0_i32_1 = arith.constant 0 : i32
    return %c0_i32, %c0_i32_0 : i32, i32
  }
  func.func @transform_10(%arg0: i32) -> (i32, i32) {
    %c0_i32 = arith.constant 0 : i32
    %c0_i32_0 = arith.constant 0 : i32
    %c0_i32_1 = arith.constant 0 : i32
    return %c0_i32, %c0_i32_0 : i32, i32
  }
  func.func @transform_11(%arg0: i32) -> (i32, i32, i32) {
    %c0_i32 = arith.constant 0 : i32
    %c0_i32_0 = arith.constant 0 : i32
    %c0_i32_1 = arith.constant 0 : i32
    %c0_i32_2 = arith.constant 0 : i32
    return %c0_i32, %c0_i32_0, %c0_i32_1 : i32, i32, i32
  }
}

</mosaic_0001>

<bundles_post_ra>
// kernel: attn_decoder_forward.1
= control target key start
LH: loop header
LB: loop body
LE: loop exit
PB: predicated region body
PF: predicated region fallthrough
CT: control target
= control target key end

     0   :  { %17 = vsyncpa [#allocation3], 0  ;;  %vm75_vm0 = vcmask 254976   ;;  %s1151_s0 = inlined_call_operand.vmem [shape: f32[2,32], index: 0, kind: input, shape index: {}]   ;;  %s1152_s1 = inlined_call_operand.vmem [shape: f32[8,2,32], index: 1, kind: input, shape index: {}]   ;;  %s1153_s2 = inlined_call_operand.vmem [shape: f32[2,32], index: 2, kind: input, shape index: {}]   ;;  %s1154_s3 = inlined_call_operand.vmem [shape: f32[2,32], index: 3, kind: input, shape index: {}]   ;;  %s1155_s4 = inlined_call_operand.vmem [shape: f32[64,32], index: 4, kind: input, shape index: {}]   ;;  %s1156_s5 = inlined_call_operand.vmem [shape: f32[32,96], index: 5, kind: input, shape index: {}]   ;;  %s1157_s6 = inlined_call_operand.vmem [shape: f32[32,96], index: 6, kind: input, shape index: {}]   ;;  %s1158_s7 = inlined_call_operand.vmem [shape: f32[32,16], index: 7, kind: input, shape index: {}]   ;;  %s1159_s8 = inlined_call_operand.vmem [shape: f32[5,96], index: 8, kind: input, shape index: {}]   ;;  %s1160_s9 = inlined_call_operand.hbm [shape: f32[2,16], index: 9, kind: output, shape index: {0}]   ;;  %s1161_s10 = inlined_call_operand.hbm [shape: f32[2,32], index: 10, kind: output, shape index: {1}]   ;;  %s1162_s11 = inlined_call_operand.vmem [shape: f32[8,2,1], index: 11, kind: output, shape index: {2}]  }
   0x1   :  { %v897_v0 = vld [vmem:[%s1151_s0] sm:$0x3]  ;;  %v902_v1 = vld [vmem:[%s1152_s1 + $0x4] sm:$0x3]  ;;  %v921_v8 = vld [vmem:[%s1152_s1 + $0x6] sm:$0x3] }
   0x2   :  { %v662_v2 = vld [vmem:[%s1154_s3] ss:$0 sm:$0xff]  ;;  %v663_v3 = vld [vmem:[%s1154_s3 + $0x1] ss:$0 sm:$0xff]  ;;  %v926_v9 = vld [vmem:[%s1152_s1 + $0x2] sm:$0x3] }
   0x3   :  { %v54_v4 = vmul.f32 %v662_v2, %v897_v0  ;;  %v914_v5 = vld [vmem:[%s1152_s1] sm:$0x3]  ;;  %v61_v6 = vmul.f32 %v663_v3, %v902_v1  ;;  %v931_v10 = vld [vmem:[%s1152_s1 + $0xa] sm:$0x3]  ;;  %v62_v11 = vmul.f32 %v663_v3, %v921_v8  ;;  %v60_v12 = vmul.f32 %v663_v3, %v926_v9  ;;  %v939_v14 = vld [vmem:[%s1152_s1 + $0x8] sm:$0x3] }
   0x4   :  { %v59_v7 = vmul.f32 %v663_v3, %v914_v5  ;;  %v64_v13 = vmul.f32 %v663_v3, %v931_v10  ;;  %v63_v17 = vmul.f32 %v663_v3, %v939_v14  ;;  %v945_v18 = vld [vmem:[%s1152_s1 + $0xe] sm:$0x3] }
   0x5   :  { %v69_v15 = vadd.f32 %v61_v6, %v54_v4 }
   0x6   :  { %v67_v16 = vadd.f32 %v59_v7, %v54_v4 }
   0x7   :  { %18 = vsyncpa [#allocation5], 0  ;;  %v70_v19 = vadd.f32 %v62_v11, %v54_v4  ;;  %v68_v20 = vadd.f32 %v60_v12, %v54_v4  ;;  %v950_v21 = vld [vmem:[%s1152_s1 + $0xc] sm:$0x3]  ;;  %v82_v22 = vsel %vm75_vm0, %v69_v15, 0.0  ;;  %v72_v24 = vadd.f32 %v64_v13, %v54_v4  ;;  %s831_s26 = smov 96  }
   0x8   :  { %v76_v23 = vsel %vm75_vm0, %v67_v16, 0.0  ;;  %83 = vadd.xlane.f32.xlu1 %v82_v22  ;;  %v66_v25 = vmul.f32 %v663_v3, %v945_v18  ;;  %v71_v28 = vadd.f32 %v63_v17, %v54_v4  ;;  %v65_v29 = vmul.f32 %v663_v3, %v950_v21  ;;  %v968_v42 = vld [vmem:[%s1159_s8] sm:$0x1f] }
   0x9   :  { %77 = vadd.xlane.f32.xlu0 %v76_v23  ;;  %v85_v26 = vsel %vm75_vm0, %v70_v19, 0.0  ;;  %v79_v27 = vsel %vm75_vm0, %v68_v20, 0.0  ;;  %v91_v30 = vsel %vm75_vm0, %v72_v24, 0.0  ;;  %v826_v36 = vmov 0  }
   0xa   :  { %v88_v31 = vsel %vm75_vm0, %v71_v28, 0.0  ;;  %v74_v32 = vadd.f32 %v66_v25, %v54_v4  ;;  %v73_v33 = vadd.f32 %v65_v29, %v54_v4  ;;  %753 = vset.pattern.permute.xlu1 %v826_v36  ;;  %752 = vset.pattern.permute.xlu0 %v826_v36  ;;  %v100_v37 = vlaneseq }
   0xb   :  { %vm112_vm1 = vcmask 1024   ;;  %vm828_vm2 = vmmov 0   ;;  %vm251_vm3 = vcmask 261120   ;;  %vm265_vm4 = vcmask 523264  }
   0xc   :  { %86 = vadd.xlane.f32.xlu1 %v85_v26  ;;  %v97_v34 = vsel %vm75_vm0, %v74_v32, 0.0  ;;  %v94_v35 = vsel %vm75_vm0, %v73_v33, 0.0  ;;  %v962_v38 = vshrl.u32 %v100_v37, 7  ;;  %vm616_vm5 = vcmask 123904  }
   0xd   :  { %80 = vadd.xlane.f32.xlu0 %v79_v27 }
   0xe   :  { %v102_v41 = vsub.s32 0, %v962_v38 }
  0x10   :  { %92 = vadd.xlane.f32.xlu1 %v91_v30  ;;  %v103_v45 = vrot.slane %v968_v42, %v102_v41 }
  0x11   :  { %89 = vadd.xlane.f32.xlu0 %v88_v31 }
  0x14   :  { %98 = vadd.xlane.f32.xlu1 %v97_v34 }
  0x15   :  { %95 = vadd.xlane.f32.xlu0 %v94_v35 }
  0x91   :  { %v84_v39 = vpop.xlane.xlu1 %83 }
  0x92   :  { %v78_v40 = vpop.xlane.xlu0 %77  ;;  %v106_v52 = vadd.f32 %v103_v45, %v84_v39 }
  0x93   :  { %v104_v48 = vadd.f32 %v103_v45, %v78_v40 }
  0x94   :  { %v115_v2 = vsel %vm112_vm1, %v106_v52, -inf }
  0x95   :  { %v87_v43 = vpop.xlane.xlu1 %86  ;;  %v113_v58 = vsel %vm112_vm1, %v104_v48, -inf }
  0x96   :  { %v81_v44 = vpop.xlane.xlu0 %80  ;;  %v107_v53 = vadd.f32 %v103_v45, %v87_v43 }
  0x97   :  { %v105_v49 = vadd.f32 %v103_v45, %v81_v44 }
  0x98   :  { %v116_v3 = vsel %vm112_vm1, %v107_v53, -inf }
  0x99   :  { %v93_v46 = vpop.xlane.xlu1 %92  ;;  %v114_v59 = vsel %vm112_vm1, %v105_v49, -inf }
  0x9a   :  { %v90_v47 = vpop.xlane.xlu0 %89  ;;  %v109_v50 = vadd.f32 %v103_v45, %v93_v46 }
  0x9b   :  { %v108_v51 = vadd.f32 %v103_v45, %v90_v47 }
  0x9c   :  { %v119_v54 = vsel %vm112_vm1, %v109_v50, -inf }
  0x9d   :  { %v117_v55 = vsel %vm112_vm1, %v108_v51, -inf  ;;  %v99_v56 = vpop.xlane.xlu1 %98  ;;  %v120_v62 = vmax.f32 %v114_v59, %v119_v54 }
  0x9e   :  { %v96_v57 = vpop.xlane.xlu0 %95  ;;  %v111_v60 = vadd.f32 %v103_v45, %v99_v56  ;;  %v118_v63 = vmax.f32 %v113_v58, %v117_v55 }
  0x9f   :  { %v110_v61 = vadd.f32 %v103_v45, %v96_v57 }
  0xa0   :  { %v123_v4 = vsel %vm112_vm1, %v111_v60, -inf  ;;  %v125_v12 = vmax.f32 %v118_v63, %v120_v62 }
  0xa1   :  { %v121_v6 = vsel %vm112_vm1, %v110_v61, -inf  ;;  %v124_v7 = vmax.f32 %v116_v3, %v123_v4 }
  0xa2   :  { %v122_v11 = vmax.f32 %v115_v2, %v121_v6 }
  0xa4   :  { %v126_v13 = vmax.f32 %v122_v11, %v124_v7  ;;  %v260_v7 = vld [vmem:[%s1155_s4 + $0x38] sm:$0xff]  ;;  %v827_v11 = vmov 0.0  }
  0xa5   :  { %692 = vmatprep.subr.mxu0 %v827_v11  ;;  %711 = vmatprep.subr.mxu1 %v827_v11 }
  0xa6   :  { %v127_v15 = vmax.f32 %v125_v12, %v126_v13  ;;  %v259_v12 = vld [vmem:[%s1155_s4 + $0x30] sm:$0xff]  ;;  %693 = vmatpush3.msra.mxu0 %v260_v7  ;;  %v258_v13 = vld [vmem:[%s1155_s4 + $0x28] sm:$0xff]  ;;  %708 = vmatprep.mubr.msk.f32.mxu0 %vm828_vm2, %v827_v11 }
  0xa7   :  { %694 = vmatprep.subr.mxu0 %v827_v11  ;;  %719 = vmatprep.mubr.msk.f32.mxu1 %vm828_vm2, %v827_v11 }
  0xa8   :  { %v128_v16 = vsub.f32 %v104_v48, %v127_v15  ;;  %v130_v17 = vsub.f32 %v106_v52, %v127_v15  ;;  %v129_v20 = vsub.f32 %v105_v49, %v127_v15  ;;  %v131_v22 = vsub.f32 %v107_v53, %v127_v15  ;;  %695 = vmatpush3.msra.mxu0 %v259_v12 }
  0xa9   :  { %v132_v24 = vsub.f32 %v108_v51, %v127_v15  ;;  %v133_v26 = vsub.f32 %v109_v50, %v127_v15  ;;  %v134_v28 = vsub.f32 %v110_v61, %v127_v15  ;;  %v135_v30 = vsub.f32 %v111_v60, %v127_v15  ;;  %696 = vmatprep.subr.mxu0 %v827_v11  ;;  %v257_v15 = vld [vmem:[%s1155_s4 + $0x20] sm:$0xff] }
  0xaa   :  { %v136_v19 = vmul.f32 1.442695, %v128_v16  ;;  %v140_v23 = vmul.f32 1.442695, %v130_v17  ;;  %v138_v25 = vmul.f32 1.442695, %v129_v20  ;;  %697 = vmatpush3.msra.mxu0 %v258_v13 }
  0xab   :  { %v142_v27 = vmul.f32 1.442695, %v131_v22  ;;  %v144_v29 = vmul.f32 1.442695, %v132_v24  ;;  %v146_v31 = vmul.f32 1.442695, %v133_v26  ;;  %698 = vmatprep.subr.mxu0 %v827_v11 }
  0xac   :  { %754 = vpow2.f32 %v136_v19  ;;  %v148_v32 = vmul.f32 1.442695, %v134_v28  ;;  %v150_v33 = vmul.f32 1.442695, %v135_v30  ;;  %v256_v16 = vld [vmem:[%s1155_s4 + $0x18] sm:$0xff]  ;;  %699 = vmatpush3.msra.mxu0 %v257_v15  ;;  %v255_v17 = vld [vmem:[%s1155_s4 + $0x10] sm:$0xff] }
  0xad   :  { %756 = vpow2.f32 %v140_v23  ;;  %700 = vmatprep.subr.mxu0 %v827_v11  ;;  %v254_v19 = vld [vmem:[%s1155_s4 + $0x8] sm:$0xff]  ;;  %v346_v13 = vsub.s32 2, %v962_v38 }
  0xae   :  { %758 = vpow2.f32 %v138_v25  ;;  %701 = vmatpush3.msra.mxu0 %v256_v16 }
  0xaf   :  { %760 = vpow2.f32 %v142_v27  ;;  %702 = vmatprep.subr.mxu0 %v827_v11  ;;  %v347_v15 = vrot.slane %v968_v42, %v346_v13 }
  0xb0   :  { %762 = vpow2.f32 %v144_v29  ;;  %703 = vmatpush3.msra.mxu0 %v255_v17 }
  0xb1   :  { %764 = vpow2.f32 %v146_v31  ;;  %704 = vmatprep.subr.mxu0 %v827_v11 }
  0xb2   :  { %766 = vpow2.f32 %v148_v32  ;;  %705 = vmatpush3.msra.mxu0 %v254_v19 }
  0xb3   :  { %768 = vpow2.f32 %v150_v33  ;;  %706 = vmatprep.subr.mxu0 %v827_v11 }
  0xb9   :  { %v755_v34 = vpop.eup %754 }
  0xba   :  { %v757_v35 = vpop.eup %756  ;;  %v152_v36 = vsel %vm112_vm1, %v755_v34, 0.0 }
  0xbb   :  { %v759_v37 = vpop.eup %758  ;;  %v155_v43 = vsel %vm112_vm1, %v757_v35, 0.0 }
  0xbc   :  { %v153_v39 = vsel %vm112_vm1, %v759_v37, 0.0  ;;  %v761_v40 = vpop.eup %760 }
  0xbd   :  { %v154_v41 = vadd.f32 %v153_v39, %v152_v36  ;;  %v763_v44 = vpop.eup %762  ;;  %v157_v46 = vsel %vm112_vm1, %v761_v40, 0.0 }
  0xbe   :  { %v765_v47 = vpop.eup %764  ;;  %v159_v49 = vsel %vm112_vm1, %v763_v44, 0.0 }
  0xbf   :  { %v156_v45 = vadd.f32 %v155_v43, %v154_v41  ;;  %v767_v50 = vpop.eup %766  ;;  %v161_v52 = vsel %vm112_vm1, %v765_v47, 0.0 }
  0xc0   :  { %v769_v53 = vpop.eup %768  ;;  %v163_v55 = vsel %vm112_vm1, %v767_v50, 0.0 }
  0xc1   :  { %v158_v48 = vadd.f32 %v157_v46, %v156_v45  ;;  %v165_v57 = vsel %vm112_vm1, %v769_v53, 0.0 }
  0xc3   :  { %v160_v51 = vadd.f32 %v159_v49, %v158_v48 }
  0xc5   :  { %v162_v54 = vadd.f32 %v161_v52, %v160_v51  ;;  %v340_v52 = vld [vmem:[%s1156_s5] sm:$0xff] }
  0xc7   :  { %v164_v56 = vadd.f32 %v163_v55, %v162_v54 }
  0xc9   :  { %v166_v58 = vadd.f32 %v165_v57, %v164_v56 }
  0xcb   :  { %770 = vrcp.f32 %v166_v58  ;;  %v424_v58 = vld [vmem:[%s1157_s6 + $0x18] sm:$0xff] }
  0xd8   :  { %v771_v59 = vpop.eup %770 }
  0xd9   :  { %v169_v60 = vmul.f32 %v771_v59, %v759_v37  ;;  %v168_v61 = vmul.f32 %v771_v59, %v755_v34  ;;  %v170_v62 = vmul.f32 %v771_v59, %v757_v35  ;;  %v171_v63 = vmul.f32 %v771_v59, %v761_v40 }
  0xda   :  { %v172_v2 = vmul.f32 %v771_v59, %v763_v44  ;;  %v173_v3 = vmul.f32 %v771_v59, %v765_v47  ;;  %v174_v4 = vmul.f32 %v771_v59, %v767_v50  ;;  %v175_v6 = vmul.f32 %v771_v59, %v769_v53  ;;  %v423_v59 = vld [vmem:[%s1157_s6 + $0x10] sm:$0xff] }
  0xdb   :  { %191 = vperm.xlu1 %753, %v169_v60   ;;  %177 = vst.msk [vmem:[%s1162_s11 + $0x2] sm:$0x3] %vm112_vm1, %v169_v60  ;;  %186 = vperm.xlu0 %752, %v168_v61   ;;  %176 = vst.msk [vmem:[%s1162_s11] sm:$0x3] %vm112_vm1, %v168_v61  ;;  %v422_v60 = vld [vmem:[%s1157_s6 + $0x8] sm:$0xff]  ;;  %v421_v61 = vld [vmem:[%s1157_s6] sm:$0xff] }
  0xdc   :  { %178 = vst.msk [vmem:[%s1162_s11 + $0x4] sm:$0x3] %vm112_vm1, %v170_v62  ;;  %179 = vst.msk [vmem:[%s1162_s11 + $0x6] sm:$0x3] %vm112_vm1, %v171_v63  ;;  %s830_s6 = smov 64  }
  0xdd   :  { %180 = vst.msk [vmem:[%s1162_s11 + $0x8] sm:$0x3] %vm112_vm1, %v172_v2  ;;  %181 = vst.msk [vmem:[%s1162_s11 + $0xa] sm:$0x3] %vm112_vm1, %v173_v3 }
  0xde   :  { %182 = vst.msk [vmem:[%s1162_s11 + $0xc] sm:$0x3] %vm112_vm1, %v174_v4  ;;  %183 = vst.msk [vmem:[%s1162_s11 + $0xe] sm:$0x3] %vm112_vm1, %v175_v6 }
  0xdf   :  { %196 = vperm.xlu1 %753, %v170_v62   ;;  %v38_v62 = vld [vmem:[%s1153_s2] sm:$0x3] }
  0xe3   :  { %201 = vperm.xlu1 %753, %v171_v63  }
  0xe7   :  { %206 = vperm.xlu1 %753, %v172_v2   ;;  %v427_v2 = vsub.s32 3, %v962_v38 }
  0xeb   :  { %211 = vperm.xlu1 %753, %v173_v3  }
  0xef   :  { %216 = vperm.xlu1 %753, %v174_v4   ;;  %v428_v4 = vrot.slane %v968_v42, %v427_v2 }
  0xf3   :  { %221 = vperm.xlu1 %753, %v175_v6  }
 0x156   :  { %v192_v20 = vpop.permute.xlu1 %191  ;;  %v187_v23 = vpop.permute.xlu0 %186 }
 0x157   :  { %v225_v25 = vmul.f32 %v192_v20, %v926_v9  ;;  %v224_v26 = vmul.f32 %v187_v23, %v914_v5 }
 0x159   :  { %v233_v29 = vsel %vm75_vm0, %v225_v25, 0.0  ;;  %v232_v30 = vsel %vm75_vm0, %v224_v26, 0.0 }
 0x15a   :  { %v197_v22 = vpop.permute.xlu1 %196  ;;  %v234_v34 = vadd.f32 %v233_v29, %v232_v30  ;;  %v539_v29 = vld [vmem:[%s1158_s7 + $0x18] sm:$0xff]  ;;  %v538_v30 = vld [vmem:[%s1158_s7 + $0x10] sm:$0xff] }
 0x15b   :  { %v226_v27 = vmul.f32 %v197_v22, %v902_v1  ;;  %v253_v1 = vld [vmem:[%s1155_s4] sm:$0xff]  ;;  %s829_s4 = smov 32  }
 0x15c   :  { %707 = vmatpush3.msra.mxu0 %v253_v1 }
 0x15d   :  { %v235_v32 = vsel %vm75_vm0, %v226_v27, 0.0  ;;  %733 = vmatprep.subr.mxu0 %v827_v11 }
 0x15e   :  { %v202_v24 = vpop.permute.xlu1 %201  ;;  %v236_v5 = vadd.f32 %v235_v32, %v234_v34  ;;  %v536_v32 = vld [vmem:[%s1158_s7] sm:$0xff] }
 0x15f   :  { %v227_v31 = vmul.f32 %v202_v24, %v921_v8  ;;  %v343_v8 = vld [vmem:[%s1156_s5 + $0x18] sm:$0xff] }
 0x160   :  { %712 = vmatpush3.msra.mxu1 %v343_v8 }
 0x161   :  { %v237_v36 = vsel %vm75_vm0, %v227_v31, 0.0  ;;  %713 = vmatprep.subr.mxu1 %v827_v11  ;;  %v537_v31 = vld [vmem:[%s1158_s7 + $0x8] sm:$0xff]  ;;  %s832_s7 = smov [#allocation4]  }
 0x162   :  { %v207_v28 = vpop.permute.xlu1 %206  ;;  %v238_v37 = vadd.f32 %v237_v36, %v236_v5  ;;  %s646_s0 = sshll.u32 %s832_s7, 4  ;;  %s647_s0 = int_to_ptr.vmem [resolvable:$true] %s646_s0 }
 0x163   :  { %v228_v33 = vmul.f32 %v207_v28, %v939_v14  ;;  %v342_v14 = vld [vmem:[%s1156_s5 + $0x10] sm:$0xff]  ;;  %s782_s27 = scalar_lea.vmem %s647_s0, 32  ;;  %p787_p1 = scmp.lt.s32.totalorder %s647_s0, %s647_s0 }
 0x164   :  { %714 = vmatpush3.msra.mxu1 %v342_v14  ;;  %v542_v14 = vsub.s32 4, %v962_v38  ;;  %p783_p0 = scmp.ne.s32.totalorder %s647_s0, %s782_s27  ;;  %p788_p2 = scmp.lt.s32.totalorder %s782_s27, %s782_s27 }
 0x165   :  { %715 = vmatprep.subr.mxu1 %v827_v11 }
 0x166   :  { %v212_v35 = vpop.permute.xlu1 %211  ;;  %p789_p3 = por %p788_p2, %p787_p1 }
 0x167   :  { %v229_v9 = vmul.f32 %v212_v35, %v931_v10  ;;  %v239_v10 = vsel %vm75_vm0, %v228_v33, 0.0 }
 0x168   :  { %v240_v43 = vadd.f32 %v239_v10, %v238_v37  ;;  %p790_p4 = pnand %p789_p3, %p783_p0 }
 0x169   :  { %v241_v40 = vsel %vm75_vm0, %v229_v9, 0.0 }
 0x16a   :  { %v217_v39 = vpop.permute.xlu1 %216  ;;  %v242_v45 = vadd.f32 %v241_v40, %v240_v43 }
 0x16b   :  { %v230_v41 = vmul.f32 %v217_v39, %v950_v21 }
 0x16d   :  { %v243_v44 = vsel %vm75_vm0, %v230_v41, 0.0 }
 0x16e   :  { %v222_v46 = vpop.permute.xlu1 %221  ;;  %v244_v48 = vadd.f32 %v243_v44, %v242_v45 }
 0x16f   :  { %v231_v47 = vmul.f32 %v222_v46, %v945_v18  ;;  %v341_v18 = vld [vmem:[%s1156_s5 + $0x8] sm:$0xff] }
 0x170   :  { %716 = vmatpush3.msra.mxu1 %v341_v18 }
 0x171   :  { %v245_v49 = vsel %vm75_vm0, %v231_v47, 0.0  ;;  %717 = vmatprep.subr.mxu1 %v827_v11 }
 0x172   :  { %v246_v50 = vadd.f32 %v245_v49, %v244_v48  ;;  %718 = vmatpush3.msra.mxu1 %v340_v52 }
 0x173   :  { %722 = vmatprep.subr.mxu1 %v827_v11 }
 0x174   :  { %248 = vrot.lane.b32.xlu1 %v246_v50, %s829_s4 }
 0x1e6   :  { %v249_v21 = vpop.permute.xlu1 %248 }
 0x1e7   :  { %v252_v51 = vsel %vm251_vm3, %v897_v0, %v249_v21  ;;  %v263_v0 = vsub.s32 1, %v962_v38 }
 0x1e8   :  { %709 = vmatmul.mubr.msk.f32.vlgmr.msra.gmra.mxu0 %vm265_vm4, %v252_v51 }
 0x1e9   :  { %741 = vmatprep.mubr.msk.f32.mxu0 %vm828_vm2, %v827_v11  ;;  %v264_v53 = vrot.slane %v968_v42, %v263_v0  ;;  %734 = vmatpush3.msra.mxu0 %v539_v29 }
 0x1ea   :  { %735 = vmatprep.subr.mxu0 %v827_v11 }
 0x1eb   :  { %736 = vmatpush3.msra.mxu0 %v538_v30 }
 0x1ec   :  { %737 = vmatprep.subr.mxu0 %v827_v11 }
 0x1ed   :  { %738 = vmatpush3.msra.mxu0 %v537_v31 }
 0x1ee   :  { %739 = vmatprep.subr.mxu0 %v827_v11 }
 0x1ef   :  { %740 = vmatpush3.msra.mxu0 %v536_v32 }
 0x2a8   :  { %v335_v54 = vpop.f32.mrf.mxu0 }
 0x2a9   :  { %v336_v55 = vadd.f32 %v335_v54, %v264_v53 }
 0x2aa   :  { %v710_v56 = vpop.f32.mrf.mxu0 }
 0x2ab   :  { %v339_v57 = vmax.f32 %v336_v55, 0.0 }
 0x2ad   :  { %720 = vmatmul.mubr.msk.f32.vlgmr.msra.gmra.mxu1 %vm251_vm3, %v339_v57 }
 0x2ae   :  { %723 = vmatpush3.msra.mxu1 %v424_v58  ;;  %730 = vmatprep.mubr.msk.f32.mxu1 %vm828_vm2, %v827_v11 }
 0x2af   :  { %724 = vmatprep.subr.mxu1 %v827_v11 }
 0x2b0   :  { %725 = vmatpush3.msra.mxu1 %v423_v59 }
 0x2b1   :  { %726 = vmatprep.subr.mxu1 %v827_v11 }
 0x2b2   :  { %727 = vmatpush3.msra.mxu1 %v422_v60 }
 0x2b3   :  { %728 = vmatprep.subr.mxu1 %v827_v11  ;;  %v543_v11 = vrot.slane %v968_v42, %v542_v14 }
 0x2b4   :  { %729 = vmatpush3.msra.mxu1 %v421_v61 }
 0x2b5   :  { %731 = vmatmul.mubr.msk.f32.vlgmr.msra.gmra.mxu1 %vm251_vm3, %v38_v62 }
 0x36d   :  { %v417_v63 = vpop.f32.mrf.mxu1 }
 0x36e   :  { %v418_v16 = vadd.f32 %v417_v63, %v347_v15 }
 0x36f   :  { %v721_v3 = vpop.f32.mrf.mxu1 }
 0x375   :  { %v498_v6 = vpop.f32.mrf.mxu1 }
 0x376   :  { %v499_v7 = vadd.f32 %v498_v6, %v428_v4 }
 0x377   :  { %v732_v12 = vpop.f32.mrf.mxu1 }
 0x378   :  { %510 = vrot.lane.b32.xlu0 %v499_v7, %s830_s6  ;;  %v502_v17 = vadd.f32 %v499_v7, %v418_v16 }
 0x37a   :  { %v503_v19 = vsub.f32 0.0, %v502_v17 }
 0x37c   :  { %v504_v20 = vmul.f32 1.442695, %v503_v19 }
 0x37e   :  { %772 = vpow2.f32 %v504_v20 }
 0x38b   :  { %v773_v22 = vpop.eup %772 }
 0x38c   :  { %v506_v23 = vadd.f32 1.0, %v773_v22 }
 0x38e   :  { %774 = vrcp.f32 %v506_v23 }
 0x39b   :  { %v775_v24 = vpop.eup %774 }
 0x39c   :  { %v520_v35 = vsub.f32 1.0, %v775_v24 }
 0x3ea   :  { %v511_v25 = vpop.permute.xlu0 %510 }
 0x3eb   :  { %v513_v26 = vmul.f32 %v775_v24, %v511_v25 }
 0x3ed   :  { %515 = vrot.lane.b32.xlu1 %v513_v26, %s830_s6 }
 0x3f1   :  { %526 = vrot.lane.b32.xlu1 %v38_v62, %s829_s4 }
 0x45f   :  { %v516_v27 = vpop.permute.xlu1 %515 }
 0x460   :  { %v518_v28 = vadd.f32 %v516_v27, %v418_v16 }
 0x462   :  { %776 = vtanh.f32 %v518_v28 }
 0x463   :  { %v527_v34 = vpop.permute.xlu1 %526 }
 0x464   :  { %v529_v9 = vmul.f32 %v775_v24, %v527_v34 }
 0x46f   :  { %v777_v33 = vpop.eup %776 }
 0x470   :  { %522 = vrot.lane.b32.xlu0 %v777_v33, %s831_s26 }
 0x4e2   :  { %v523_v36 = vpop.permute.xlu0 %522 }
 0x4e3   :  { %v525_v1 = vmul.f32 %v523_v36, %v520_v35 }
 0x4e5   :  { %v530_v5 = vadd.f32 %v529_v9, %v525_v1 }
 0x4e7   :  { %532 = vrot.lane.b32.xlu0 %v530_v5, %s831_s26 }
 0x559   :  { %v533_v8 = vpop.permute.xlu0 %532 }
 0x55a   :  { %535 = vst.msk [vmem:[#allocation4] sm:$0x3] %vm75_vm0, %v533_v8  ;;  %742 = vmatmul.mubr.msk.f32.vlgmr.msra.gmra.mxu0 %vm251_vm3, %v533_v8 }
 0x61a   :  { %v612_v10 = vpop.f32.mrf.mxu0 }
 0x61b   :  { %v613_v37 = vadd.f32 %v612_v10, %v543_v11 }
 0x61c   :  { %v743_v39 = vpop.f32.mrf.mxu0 }
 0x61d   :  { %v617_v40 = vsel %vm616_vm5, %v613_v37, -inf }
 0x61e   :  { %618 = vmax.xlane.f32.xlu1 %v617_v40 }
 0x6a7   :  { %v619_v41 = vpop.xlane.xlu1 %618 }
 0x6a8   :  { %v620_v43 = vsub.f32 %v613_v37, %v619_v41 }
 0x6aa   :  { %v621_v44 = vmul.f32 1.442695, %v620_v43 }
 0x6ac   :  { %778 = vpow2.f32 %v621_v44 }
 0x6b9   :  { %v779_v45 = vpop.eup %778 }
 0x6ba   :  { %v623_v46 = vsel %vm616_vm5, %v779_v45, 0.0 }
 0x6bb   :  { %624 = vadd.xlane.f32.xlu0 %v623_v46 }
 0x6bc   :  { %793 = shalt.err (!%p790_p4)
}
 0x6bd   :  { %649 = dma.vmem_to_hbm [thread:$0]  %s647_s0, 32, %s1161_s10, [#allocation5]  }
 0x6be   :  { %s833_s29 = smov [#allocation2]  }
 0x6bf   :  { %s636_s3 = sshll.u32 %s833_s29, 4  ;;  %s637_s3 = int_to_ptr.vmem [resolvable:$true] %s636_s3 }
 0x6c0   :  { %s802_s30 = scalar_lea.vmem %s637_s3, 32  ;;  %p807_p6 = scmp.lt.s32.totalorder %s637_s3, %s637_s3 }
 0x6c1   :  { %p803_p5 = scmp.ne.s32.totalorder %s637_s3, %s802_s30  ;;  %p808_p7 = scmp.lt.s32.totalorder %s802_s30, %s802_s30 }
 0x6c3   :  { %p809_p8 = por %p808_p7, %p807_p6 }
 0x6c5   :  { %p810_p9 = pnand %p809_p8, %p803_p5 }
 0x744   :  { %v625_v38 = vpop.xlane.xlu0 %624 }
 0x745   :  { %780 = vlog2.f32 %v625_v38 }
 0x752   :  { %v781_v42 = vpop.eup %780 }
 0x753   :  { %v627_v47 = vmul.f32 0.6931472, %v781_v42 }
 0x755   :  { %v628_v48 = vsub.f32 %v620_v43, %v627_v47 }
 0x757   :  { %629 = vst.msk [vmem:[#allocation2] sm:$0x3] %vm616_vm5, %v628_v48 }
 0x758   :  { %813 = shalt.err (!%p810_p9)
}
 0x759   :  { %639 = dma.vmem_to_hbm [thread:$0]  %s637_s3, 32, %s1160_s9, [#allocation3]  }
 0x75a   :  { %822 = dma.done.wait [#allocation3], 32  }
 0x75b   :  { %823 = vsyncadd [#allocation3], 4294967264 }
 0x75c   :  { %824 = dma.done.wait [#allocation5], 32  }
 0x75d   :  { %825 = vsyncadd [#allocation5], 4294967264 }
 0x75e   :  { %660 = vsyncpa [#allocation3], 1 }
 0x75f   :  { %661 = vsyncpa [#allocation5], 1 }

</bundles_post_ra>
